<compile_context>
chip_gen: v5e
topology: v5e:2x2
jax: 0.10.0
libtpu: 0.0.40
codegen_flags: <defaults>
</compile_context>

<pallas_src>
import functools

import jax
import jax.numpy as jnp
from jax.experimental import pallas as pl
from jax.experimental.pallas import tpu as pltpu

IN_DIM = 28 * 28      # 784
H1 = 128
H2 = 256
OUT_DIM = 10
OUT_PAD = 128         # lane-dense final-layer width; logits live in [:, :10]


def fcnn_kernel(x_ref, w1_ref, b1_ref, w2_ref, b2_ref, w3_ref, b3_ref, o_ref):
    # Layer 1: (TB, 784) @ (784, 128) + (1, 128), ReLU.
    # bf16 operands feed the MXU; accumulation and epilogue stay in f32.
    x = x_ref[...].astype(jnp.bfloat16)
    h1 = jnp.dot(x, w1_ref[...], preferred_element_type=jnp.float32)
    h1 = jnp.maximum(h1 + b1_ref[...], 0.0)
    # Layer 2: (TB, 128) @ (128, 256) + (1, 256), ReLU.
    h2 = jnp.dot(h1.astype(jnp.bfloat16), w2_ref[...],
                 preferred_element_type=jnp.float32)
    h2 = jnp.maximum(h2 + b2_ref[...], 0.0)
    # Layer 3: (TB, 256) @ (256, 128 zero-padded), no activation. Lane-dense store.
    out = jnp.dot(h2.astype(jnp.bfloat16), w3_ref[...],
                  preferred_element_type=jnp.float32)
    o_ref[...] = (out + b3_ref[...]).astype(o_ref.dtype)


@functools.partial(jax.jit, static_argnames=("tb",))
def fcnn_forward(x, params, tb=512):
    """x: (B, 1, 28, 28) / (B, 28, 28) / (B, 784), f32 or bf16 -> (B, 10) f32."""
    w1, b1, w2, b2, w3, b3 = params
    x2d = x.reshape(-1, IN_DIM)                 # torch: x.view(-1, 784)
    if x2d.dtype != jnp.bfloat16:               # accept bf16 directly; no extra pass
        x2d = x2d.astype(jnp.float32)
    B = x2d.shape[0]
    TB = B if B <= tb else tb                   # small batches: one full-array block
    grid = (pl.cdiv(B, TB),)

    # x and the output are tiled over the batch; params/biases use constant
    # index_maps so they stay resident in VMEM across grid steps.
    in_specs = [
        pl.BlockSpec((TB, IN_DIM), lambda i: (i, 0)),        # x tile
        pl.BlockSpec((IN_DIM, H1), lambda i: (0, 0)),        # w1 (resident)
        pl.BlockSpec((1, H1), lambda i: (0, 0)),             # b1 (resident)
        pl.BlockSpec((H1, H2), lambda i: (0, 0)),            # w2 (resident)
        pl.BlockSpec((1, H2), lambda i: (0, 0)),             # b2 (resident)
        pl.BlockSpec((H2, OUT_PAD), lambda i: (0, 0)),       # w3 padded (resident)
        pl.BlockSpec((1, OUT_PAD), lambda i: (0, 0)),        # b3 padded (resident)
    ]
    out_specs = pl.BlockSpec((TB, OUT_PAD), lambda i: (i, 0))

    out_padded = pl.pallas_call(
        fcnn_kernel,
        out_shape=jax.ShapeDtypeStruct((B, OUT_PAD), jnp.float32),
        grid=grid,
        in_specs=in_specs,
        out_specs=out_specs,
        compiler_params=pltpu.CompilerParams(
            dimension_semantics=("parallel",),   # shards batch steps across v7x's 2 TCs
        ),
    )(x2d, w1, b1, w2, b2, w3, b3)

    return out_padded[:, :OUT_DIM]


def init_params(key):
    """Deterministic init mimicking nn.Linear's U(-1/sqrt(fan_in), 1/sqrt(fan_in)).

    Weights stored as (in_features, out_features) in bf16; biases as (1, N) f32.
    The final layer is zero-padded from 10 to 128 output columns (lane-dense).
    """
    dims = [(IN_DIM, H1), (H1, H2), (H2, OUT_DIM)]
    raw = []
    for i, (fin, fout) in enumerate(dims):
        kw, kb = jax.random.split(jax.random.fold_in(key, i))
        bound = 1.0 / jnp.sqrt(float(fin))
        w = jax.random.uniform(kw, (fin, fout), jnp.float32, -bound, bound)
        b = jax.random.uniform(kb, (1, fout), jnp.float32, -bound, bound)
        raw.append((w, b))
    (w1, b1), (w2, b2), (w3, b3) = raw
    w3 = jnp.pad(w3, ((0, 0), (0, OUT_PAD - OUT_DIM)))
    b3 = jnp.pad(b3, ((0, 0), (0, OUT_PAD - OUT_DIM)))
    return (w1.astype(jnp.bfloat16), b1,
            w2.astype(jnp.bfloat16), b2,
            w3.astype(jnp.bfloat16), b3)


if __name__ == "__main__":
    key = jax.random.PRNGKey(0)
    params = init_params(key)

    # Small MNIST-like batch: (B, C, H, W) = (4, 1, 28, 28)
    x = jax.random.normal(jax.random.fold_in(key, 100), (4, 1, 28, 28), jnp.float32)

    out = fcnn_forward(x, params)
    out = jax.block_until_ready(out)

    # Reference in plain JAX with the *same* bf16-operand / f32-accumulation math.
    w1, b1, w2, b2, w3, b3 = params
    xf = x.reshape(-1, IN_DIM).astype(jnp.bfloat16)
    r1 = jnp.maximum(jnp.dot(xf, w1, preferred_element_type=jnp.float32) + b1, 0.0)
    r2 = jnp.maximum(
        jnp.dot(r1.astype(jnp.bfloat16), w2, preferred_element_type=jnp.float32) + b2,
        0.0)
    ref = (jnp.dot(r2.astype(jnp.bfloat16), w3, preferred_element_type=jnp.float32)
           + b3)[:, :OUT_DIM]

    assert out.shape == (4, OUT_DIM)
    assert out.dtype == jnp.float32
    assert jnp.allclose(out, ref, atol=2e-3, rtol=2e-3), (
        float(jnp.max(jnp.abs(out - ref))))

    print("KERNEL_OK")
</pallas_src>

<mosaic_0001>
module attributes {stable_mosaic.version = 11 : i64} {
  func.func @fcnn_kernel(%arg0: i32, %arg1: memref<4x784xf32, #tpu.memory_space<vmem>>, %arg2: memref<784x128xbf16, #tpu.memory_space<vmem>>, %arg3: memref<1x128xf32, #tpu.memory_space<vmem>>, %arg4: memref<128x256xbf16, #tpu.memory_space<vmem>>, %arg5: memref<1x256xf32, #tpu.memory_space<vmem>>, %arg6: memref<256x128xbf16, #tpu.memory_space<vmem>>, %arg7: memref<1x128xf32, #tpu.memory_space<vmem>>, %arg8: memref<4x128xf32, #tpu.memory_space<vmem>>) attributes {dimension_semantics = [#tpu.dimension_semantics<parallel>], iteration_bounds = array<i64: 1>, scalar_prefetch = 0 : i64, scratch_operands = 0 : i64, tpu.core_type = #tpu.core_type<tc>, window_params = [{transform_indices = @transform_0, window_bounds = array<i64: 4, 784>}, {pipeline_mode = #tpu.pipeline_mode<synchronous>, transform_indices = @transform_1, window_bounds = array<i64: 784, 128>}, {pipeline_mode = #tpu.pipeline_mode<synchronous>, transform_indices = @transform_2, window_bounds = array<i64: 1, 128>}, {pipeline_mode = #tpu.pipeline_mode<synchronous>, transform_indices = @transform_3, window_bounds = array<i64: 128, 256>}, {pipeline_mode = #tpu.pipeline_mode<synchronous>, transform_indices = @transform_4, window_bounds = array<i64: 1, 256>}, {pipeline_mode = #tpu.pipeline_mode<synchronous>, transform_indices = @transform_5, window_bounds = array<i64: 256, 128>}, {pipeline_mode = #tpu.pipeline_mode<synchronous>, transform_indices = @transform_6, window_bounds = array<i64: 1, 128>}, {transform_indices = @transform_7, window_bounds = array<i64: 4, 128>}]} {
    %c0 = arith.constant 0 : index
    %c0_0 = arith.constant 0 : index
    %0 = vector.load %arg1[%c0, %c0_0] : memref<4x784xf32, #tpu.memory_space<vmem>>, vector<4x784xf32>
    %1 = arith.truncf %0 : vector<4x784xf32> to vector<4x784xbf16>
    %c0_1 = arith.constant 0 : index
    %c0_2 = arith.constant 0 : index
    %2 = vector.load %arg2[%c0_1, %c0_2] : memref<784x128xbf16, #tpu.memory_space<vmem>>, vector<784x128xbf16>
    %cst = arith.constant dense<0.000000e+00> : vector<4x128xf32>
    %3 = tpu.matmul %1, %2, %cst {dimension_numbers = #tpu.dot_dimension_numbers<[1], [0], [0], [1], [0, 0, 1, 1], [], []>} : vector<4x784xbf16>, vector<784x128xbf16>, vector<4x128xf32> -> vector<4x128xf32>
    %c0_3 = arith.constant 0 : index
    %c0_4 = arith.constant 0 : index
    %4 = vector.load %arg3[%c0_3, %c0_4] : memref<1x128xf32, #tpu.memory_space<vmem>>, vector<1x128xf32>
    %5 = vector.broadcast %4 : vector<1x128xf32> to vector<4x128xf32>
    %6 = arith.addf %3, %5 : vector<4x128xf32>
    %cst_5 = arith.constant 0.000000e+00 : f32
    %7 = vector.broadcast %cst_5 : f32 to vector<4x128xf32>
    %8 = arith.maximumf %6, %7 : vector<4x128xf32>
    %9 = arith.truncf %8 : vector<4x128xf32> to vector<4x128xbf16>
    %c0_6 = arith.constant 0 : index
    %c0_7 = arith.constant 0 : index
    %10 = vector.load %arg4[%c0_6, %c0_7] : memref<128x256xbf16, #tpu.memory_space<vmem>>, vector<128x256xbf16>
    %cst_8 = arith.constant dense<0.000000e+00> : vector<4x256xf32>
    %11 = tpu.matmul %9, %10, %cst_8 {dimension_numbers = #tpu.dot_dimension_numbers<[1], [0], [0], [1], [0, 0, 1, 1], [], []>} : vector<4x128xbf16>, vector<128x256xbf16>, vector<4x256xf32> -> vector<4x256xf32>
    %c0_9 = arith.constant 0 : index
    %c0_10 = arith.constant 0 : index
    %12 = vector.load %arg5[%c0_9, %c0_10] : memref<1x256xf32, #tpu.memory_space<vmem>>, vector<1x256xf32>
    %13 = vector.broadcast %12 : vector<1x256xf32> to vector<4x256xf32>
    %14 = arith.addf %11, %13 : vector<4x256xf32>
    %cst_11 = arith.constant 0.000000e+00 : f32
    %15 = vector.broadcast %cst_11 : f32 to vector<4x256xf32>
    %16 = arith.maximumf %14, %15 : vector<4x256xf32>
    %17 = arith.truncf %16 : vector<4x256xf32> to vector<4x256xbf16>
    %c0_12 = arith.constant 0 : index
    %c0_13 = arith.constant 0 : index
    %18 = vector.load %arg6[%c0_12, %c0_13] : memref<256x128xbf16, #tpu.memory_space<vmem>>, vector<256x128xbf16>
    %cst_14 = arith.constant dense<0.000000e+00> : vector<4x128xf32>
    %19 = tpu.matmul %17, %18, %cst_14 {dimension_numbers = #tpu.dot_dimension_numbers<[1], [0], [0], [1], [0, 0, 1, 1], [], []>} : vector<4x256xbf16>, vector<256x128xbf16>, vector<4x128xf32> -> vector<4x128xf32>
    %c0_15 = arith.constant 0 : index
    %c0_16 = arith.constant 0 : index
    %20 = vector.load %arg7[%c0_15, %c0_16] : memref<1x128xf32, #tpu.memory_space<vmem>>, vector<1x128xf32>
    %21 = vector.broadcast %20 : vector<1x128xf32> to vector<4x128xf32>
    %22 = arith.addf %19, %21 : vector<4x128xf32>
    %c0_17 = arith.constant 0 : index
    %c0_18 = arith.constant 0 : index
    %23 = vector.load %arg8[%c0_17, %c0_18] : memref<4x128xf32, #tpu.memory_space<vmem>>, vector<4x128xf32>
    tpu.vector_store %arg8[%c0_17, %c0_18], %22 {strides = array<i32>} : memref<4x128xf32, #tpu.memory_space<vmem>>, vector<4x128xf32>,
    return
  }
  func.func @transform_0(%arg0: i32) -> (i32, i32) {
    %c0_i32 = arith.constant 0 : i32
    %c0_i32_0 = arith.constant 0 : i32
    return %arg0, %c0_i32 : i32, i32
  }
  func.func @transform_1(%arg0: i32) -> (i32, i32) {
    %c0_i32 = arith.constant 0 : i32
    %c0_i32_0 = arith.constant 0 : i32
    %c0_i32_1 = arith.constant 0 : i32
    return %c0_i32, %c0_i32_0 : i32, i32
  }
  func.func @transform_2(%arg0: i32) -> (i32, i32) {
    %c0_i32 = arith.constant 0 : i32
    %c0_i32_0 = arith.constant 0 : i32
    %c0_i32_1 = arith.constant 0 : i32
    return %c0_i32, %c0_i32_0 : i32, i32
  }
  func.func @transform_3(%arg0: i32) -> (i32, i32) {
    %c0_i32 = arith.constant 0 : i32
    %c0_i32_0 = arith.constant 0 : i32
    %c0_i32_1 = arith.constant 0 : i32
    return %c0_i32, %c0_i32_0 : i32, i32
  }
  func.func @transform_4(%arg0: i32) -> (i32, i32) {
    %c0_i32 = arith.constant 0 : i32
    %c0_i32_0 = arith.constant 0 : i32
    %c0_i32_1 = arith.constant 0 : i32
    return %c0_i32, %c0_i32_0 : i32, i32
  }
  func.func @transform_5(%arg0: i32) -> (i32, i32) {
    %c0_i32 = arith.constant 0 : i32
    %c0_i32_0 = arith.constant 0 : i32
    %c0_i32_1 = arith.constant 0 : i32
    return %c0_i32, %c0_i32_0 : i32, i32
  }
  func.func @transform_6(%arg0: i32) -> (i32, i32) {
    %c0_i32 = arith.constant 0 : i32
    %c0_i32_0 = arith.constant 0 : i32
    %c0_i32_1 = arith.constant 0 : i32
    return %c0_i32, %c0_i32_0 : i32, i32
  }
  func.func @transform_7(%arg0: i32) -> (i32, i32) {
    %c0_i32 = arith.constant 0 : i32
    %c0_i32_0 = arith.constant 0 : i32
    return %arg0, %c0_i32 : i32, i32
  }
}

</mosaic_0001>

<bundles_post_ra>
// kernel: fcnn_forward.1
= control target key start
LH: loop header
LB: loop body
LE: loop exit
PB: predicated region body
PF: predicated region fallthrough
CT: control target
= control target key end

     0   :  { %12 = vsyncpa [#allocation3], 0  ;;  %s1615_s0 = inlined_call_operand.vmem [shape: f32[4,784], index: 0, kind: input, shape index: {}]   ;;  %s1616_s1 = inlined_call_operand.vmem [shape: bf16[784,128], index: 1, kind: input, shape index: {}]   ;;  %s1617_s2 = inlined_call_operand.vmem [shape: f32[1,128], index: 2, kind: input, shape index: {}]   ;;  %s1618_s3 = inlined_call_operand.hbm [shape: bf16[128,256], index: 3, kind: input, shape index: {}]   ;;  %s1619_s4 = inlined_call_operand.vmem [shape: f32[1,256], index: 4, kind: input, shape index: {}]   ;;  %s1620_s5 = inlined_call_operand.hbm [shape: bf16[256,128], index: 5, kind: input, shape index: {}]   ;;  %s1621_s6 = inlined_call_operand.vmem [shape: f32[1,128], index: 6, kind: input, shape index: {}]   ;;  %s1622_s7 = inlined_call_operand.hbm [shape: f32[4,128], index: 7, kind: output, shape index: {}]  }
   0x1   :  { %13 = vsyncpa [#allocation6], 0 }
   0x2   :  { %14 = vsyncpa [#allocation4], 0  ;;  %s25_s26 = sshll.u32 %s1618_s3, 4  ;;  %s1391_s27 = smov [#allocation2]   ;;  %s26_s26 = int_to_ptr.hbm [resolvable:$true] %s25_s26 }
   0x3   :  { %s27_s28 = sshll.u32 %s1391_s27, 4  ;;  %s40_s8 = sshll.u32 %s1620_s5, 4  ;;  %s28_s28 = int_to_ptr.vmem [resolvable:$true] %s27_s28  ;;  %s41_s8 = int_to_ptr.hbm [resolvable:$true] %s40_s8 }
   0x4   :  { %s1392_s9 = smov 128   ;;  %s1393_s10 = smov 8  }
   0x5   :  { %33 = dma.hbm_to_vmem [thread:$0]  %s26_s26, 2048, %s28_s28, [#allocation3], %s1392_s9, %s1392_s9, %s1393_s10  }
   0x6   :  { %s1394_s11 = smov [#allocation5]   ;;  %s1395_s13 = smov 64  }
   0x7   :  { %s42_s12 = sshll.u32 %s1394_s11, 4  ;;  %s1396_s14 = smov 4   ;;  %s43_s12 = int_to_ptr.vmem [resolvable:$true] %s42_s12 }
   0x8   :  { %48 = dma.hbm_to_vmem [thread:$0]  %s41_s8, 2048, %s43_s12, [#allocation6], %s1395_s13, %s1395_s13, %s1396_s14  }
   0x9   :  { %1385 = dma.done.wait [#allocation3], 2048  }
   0xa   :  { %1386 = vsyncadd [#allocation3], 4294965248 }
   0xb   :  { %1387 = dma.done.wait [#allocation6], 2048  }
   0xc   :  { %1388 = vsyncadd [#allocation6], 4294965248  ;;  %v1230_v0 = vld [vmem:[%s1616_s1 + $0x38] sm:$0xff]  ;;  %v1229_v3 = vld [vmem:[%s1616_s1 + $0x30] sm:$0xff]  ;;  %vm492_vm0 = vcmask 130048   ;;  %s887_s24 = sshll.u32 %s1622_s7, 4  ;;  %s888_s24 = int_to_ptr.hbm [resolvable:$true] %s887_s24 }
   0xd   :  { %v1238_v1 = vld [vmem:[%s1616_s1 + $0x78] sm:$0xff]  ;;  %496 = vmatpush.bf16.msra.mxu0 %v1230_v0  ;;  %v1237_v4 = vld [vmem:[%s1616_s1 + $0x70] sm:$0xff]  ;;  %v1228_v8 = vld [vmem:[%s1616_s1 + $0x28] sm:$0xff] }
   0xe   :  { %v1246_v2 = vld [vmem:[%s1616_s1 + $0xb8] sm:$0xff]  ;;  %509 = vmatpush.bf16.msra.mxu1 %v1238_v1  ;;  %v1245_v5 = vld [vmem:[%s1616_s1 + $0xb0] sm:$0xff]  ;;  %v1236_v9 = vld [vmem:[%s1616_s1 + $0x68] sm:$0xff] }
   0xf   :  { %522 = vmatpush.bf16.msra.mxu2 %v1246_v2  ;;  %v1254_v6 = vld [vmem:[%s1616_s1 + $0xf8] sm:$0xff]  ;;  %v1253_v7 = vld [vmem:[%s1616_s1 + $0xf0] sm:$0xff]  ;;  %v1244_v10 = vld [vmem:[%s1616_s1 + $0xa8] sm:$0xff] }
  0x10   :  { %535 = vmatpush.bf16.msra.mxu3 %v1254_v6  ;;  %v1252_v11 = vld [vmem:[%s1616_s1 + $0xe8] sm:$0xff]  ;;  %v1227_v12 = vld [vmem:[%s1616_s1 + $0x20] sm:$0xff]  ;;  %v1226_v18 = vld [vmem:[%s1616_s1 + $0x18] sm:$0xff] }
  0x11   :  { %497 = vmatpush.bf16.msra.mxu0 %v1229_v3  ;;  %v1235_v13 = vld [vmem:[%s1616_s1 + $0x60] sm:$0xff]  ;;  %v61_v15 = vld [vmem:[%s1615_s0 + $0x8] sm:$0xff]  ;;  %v1234_v19 = vld [vmem:[%s1616_s1 + $0x58] sm:$0xff] }
  0x12   :  { %510 = vmatpush.bf16.msra.mxu1 %v1237_v4  ;;  %v1243_v14 = vld [vmem:[%s1616_s1 + $0xa0] sm:$0xff]  ;;  %70 = vst [vmem:[#allocation1 + $0x10] ss:$2 sm:$0xff] %v61_v15  ;;  %v1242_v20 = vld [vmem:[%s1616_s1 + $0x98] sm:$0xff]  ;;  %v1225_v23 = vld [vmem:[%s1616_s1 + $0x10] sm:$0xff] }
  0x13   :  { %523 = vmatpush.bf16.msra.mxu2 %v1245_v5  ;;  %v60_v16 = vld [vmem:[%s1615_s0] sm:$0xff]  ;;  %v63_v21 = vld [vmem:[%s1615_s0 + $0x18] sm:$0xf]  ;;  %v1233_v24 = vld [vmem:[%s1616_s1 + $0x50] sm:$0xff] }
  0x14   :  { %536 = vmatpush.bf16.msra.mxu3 %v1253_v7  ;;  %v1251_v17 = vld [vmem:[%s1616_s1 + $0xe0] sm:$0xff]  ;;  %68 = vst [vmem:[#allocation1] ss:$2 sm:$0xff] %v60_v16  ;;  %v1250_v22 = vld [vmem:[%s1616_s1 + $0xd8] sm:$0xff]  ;;  %v1241_v25 = vld [vmem:[%s1616_s1 + $0x90] sm:$0xff] }
  0x15   :  { %498 = vmatpush.bf16.msra.mxu0 %v1228_v8  ;;  %74 = vst [vmem:[#allocation1 + $0x30] ss:$2 sm:$0xff] %v63_v21  ;;  %v1249_v26 = vld [vmem:[%s1616_s1 + $0xd0] sm:$0xff]  ;;  %v1224_v28 = vld [vmem:[%s1616_s1 + $0x8] sm:$0xff]  ;;  %v1223_v31 = vld [vmem:[%s1616_s1] sm:$0xff] }
  0x16   :  { %511 = vmatpush.bf16.msra.mxu1 %v1236_v9  ;;  %v62_v27 = vld [vmem:[%s1615_s0 + $0x10] sm:$0xff]  ;;  %v1232_v29 = vld [vmem:[%s1616_s1 + $0x48] sm:$0xff]  ;;  %v1231_v32 = vld [vmem:[%s1616_s1 + $0x40] sm:$0xff] }
  0x17   :  { %524 = vmatpush.bf16.msra.mxu2 %v1244_v10  ;;  %72 = vst [vmem:[#allocation1 + $0x20] ss:$2 sm:$0xff] %v62_v27  ;;  %v1240_v30 = vld [vmem:[%s1616_s1 + $0x88] sm:$0xff]  ;;  %v1262_v36 = vld [vmem:[%s1616_s1 + $0x138] sm:$0xff]  ;;  %v1239_v38 = vld [vmem:[%s1616_s1 + $0x80] sm:$0xff] }
  0x18   :  { %537 = vmatpush.bf16.msra.mxu3 %v1252_v11  ;;  %v1248_v33 = vld [vmem:[%s1616_s1 + $0xc8] sm:$0xff]  ;;  %v1270_v37 = vld [vmem:[%s1616_s1 + $0x178] sm:$0xff]  ;;  %v1247_v42 = vld [vmem:[%s1616_s1 + $0xc0] sm:$0xff] }
  0x19   :  { %499 = vmatpush.bf16.msra.mxu0 %v1227_v12  ;;  %v77_v39 = vld.sshfl [vmem:[#allocation1 + $0x10] sm:$0xff pattern:$0x75316420]  ;;  %v1271_v43 = vld [vmem:[%s1616_s1 + $0x180] sm:$0xff]  ;;  %v1260_v49 = vld [vmem:[%s1616_s1 + $0x128] sm:$0xff] }
  0x1a   :  { %512 = vmatpush.bf16.msra.mxu1 %v1235_v13  ;;  %v78_v44 = vld.sshfl [vmem:[#allocation1 + $0x18] sm:$0xff pattern:$0x75316420]  ;;  %v1261_v45 = vld [vmem:[%s1616_s1 + $0x130] sm:$0xff]  ;;  %v91_v47 = vpack.c.bf16 %v77_v39, %v77_v39  ;;  %v1268_v50 = vld [vmem:[%s1616_s1 + $0x168] sm:$0xff] }
  0x1b   :  { %525 = vmatpush.bf16.msra.mxu2 %v1243_v14  ;;  %v75_v34 = vld.sshfl [vmem:[#allocation1] sm:$0xff pattern:$0x75316420]  ;;  %v76_v35 = vld.sshfl [vmem:[#allocation1 + $0x8] sm:$0xff pattern:$0x75316420]  ;;  %v92_v48 = vpack.c.bf16 %v78_v44, %v78_v44 }
  0x1c   :  { %538 = vmatpush.bf16.msra.mxu3 %v1251_v17  ;;  %v89_v40 = vpack.c.bf16 %v75_v34, %v75_v34  ;;  %v90_v41 = vpack.c.bf16 %v76_v35, %v76_v35  ;;  %v1269_v46 = vld [vmem:[%s1616_s1 + $0x170] sm:$0xff]  ;;  %v1259_v51 = vld [vmem:[%s1616_s1 + $0x120] sm:$0xff]  ;;  %v1258_v53 = vld [vmem:[%s1616_s1 + $0x118] sm:$0xff] }
  0x1d   :  { %500 = vmatpush.bf16.msra.mxu0 %v1226_v18  ;;  %v1267_v52 = vld [vmem:[%s1616_s1 + $0x160] sm:$0xff]  ;;  %v1266_v54 = vld [vmem:[%s1616_s1 + $0x158] sm:$0xff]  ;;  %v81_v55 = vld.sshfl [vmem:[#allocation1 + $0x30] sm:$0xff pattern:$0x75316420] }
  0x1e   :  { %513 = vmatpush.bf16.msra.mxu1 %v1234_v19  ;;  %v1257_v56 = vld [vmem:[%s1616_s1 + $0x110] sm:$0xff]  ;;  %v95_v58 = vpack.c.bf16 %v81_v55, %v81_v55  ;;  %v1256_v59 = vld [vmem:[%s1616_s1 + $0x108] sm:$0xff]  ;;  %v1255_v61 = vld [vmem:[%s1616_s1 + $0x100] sm:$0xff] }
  0x1f   :  { %526 = vmatpush.bf16.msra.mxu2 %v1242_v20  ;;  %v1265_v57 = vld [vmem:[%s1616_s1 + $0x150] sm:$0xff]  ;;  %v1264_v60 = vld [vmem:[%s1616_s1 + $0x148] sm:$0xff]  ;;  %v1263_v62 = vld [vmem:[%s1616_s1 + $0x140] sm:$0xff] }
  0x20   :  { %539 = vmatpush.bf16.msra.mxu3 %v1250_v22  ;;  %v79_v63 = vld.sshfl [vmem:[#allocation1 + $0x20] sm:$0xff pattern:$0x75316420]  ;;  %v80_v0 = vld.sshfl [vmem:[#allocation1 + $0x28] sm:$0xff pattern:$0x75316420] }
  0x21   :  { %501 = vmatpush.bf16.msra.mxu0 %v1225_v23  ;;  %v93_v1 = vpack.c.bf16 %v79_v63, %v79_v63  ;;  %v94_v2 = vpack.c.bf16 %v80_v0, %v80_v0  ;;  %v1153_v3 = vld [vmem:[#allocation2 + $0x70] sm:$0xf]  ;;  %v1287_v4 = vld [vmem:[#allocation2 + $0x74] sm:$0xf0]  ;;  %v1286_v5 = vld [vmem:[#allocation2 + $0x74] sm:$0xf] }
  0x22   :  { %514 = vmatpush.bf16.msra.mxu1 %v1233_v24  ;;  %v1154_v6 = vor.u32 %v1287_v4, %v1153_v3  ;;  %v1155_v7 = vld [vmem:[#allocation2 + $0x78] sm:$0xf0]  ;;  %v1145_v9 = vld [vmem:[#allocation2 + $0x60] sm:$0xf]  ;;  %v1285_v10 = vld [vmem:[#allocation2 + $0x64] sm:$0xf0] }
  0x23   :  { %527 = vmatpush.bf16.msra.mxu2 %v1241_v25  ;;  %v1158_v8 = vor.u32 %v1286_v5, %v1155_v7  ;;  %v1284_v11 = vld [vmem:[#allocation2 + $0x64] sm:$0xf]  ;;  %v1146_v12 = vor.u32 %v1285_v10, %v1145_v9  ;;  %v1147_v13 = vld [vmem:[#allocation2 + $0x68] sm:$0xf0]  ;;  %v1137_v15 = vld [vmem:[#allocation2 + $0x50] sm:$0xf] }
  0x24   :  { %540 = vmatpush.bf16.msra.mxu3 %v1249_v26  ;;  %v1150_v14 = vor.u32 %v1284_v11, %v1147_v13  ;;  %v1283_v16 = vld [vmem:[#allocation2 + $0x54] sm:$0xf0]  ;;  %v1282_v17 = vld [vmem:[#allocation2 + $0x54] sm:$0xf]  ;;  %v1139_v19 = vld [vmem:[#allocation2 + $0x58] sm:$0xf0] }
  0x25   :  { %502 = vmatpush.bf16.msra.mxu0 %v1224_v28  ;;  %v1138_v18 = vor.u32 %v1283_v16, %v1137_v15  ;;  %v1142_v20 = vor.u32 %v1282_v17, %v1139_v19  ;;  %v1129_v21 = vld [vmem:[#allocation2 + $0x40] sm:$0xf]  ;;  %v1281_v22 = vld [vmem:[#allocation2 + $0x44] sm:$0xf0]  ;;  %v1280_v23 = vld [vmem:[#allocation2 + $0x44] sm:$0xf] }
  0x26   :  { %515 = vmatpush.bf16.msra.mxu1 %v1232_v29  ;;  %v1130_v24 = vor.u32 %v1281_v22, %v1129_v21  ;;  %v1131_v25 = vld [vmem:[#allocation2 + $0x48] sm:$0xf0]  ;;  %v1121_v27 = vld [vmem:[#allocation2 + $0x30] sm:$0xf]  ;;  %v1279_v28 = vld [vmem:[#allocation2 + $0x34] sm:$0xf0] }
  0x27   :  { %528 = vmatpush.bf16.msra.mxu2 %v1240_v30  ;;  %v1134_v26 = vor.u32 %v1280_v23, %v1131_v25  ;;  %v1278_v29 = vld [vmem:[#allocation2 + $0x34] sm:$0xf]  ;;  %v1122_v30 = vor.u32 %v1279_v28, %v1121_v27  ;;  %v1277_v34 = vld [vmem:[#allocation2 + $0x24] sm:$0xf0]  ;;  %v1276_v35 = vld [vmem:[#allocation2 + $0x24] sm:$0xf] }
  0x28   :  { %541 = vmatpush.bf16.msra.mxu3 %v1248_v33  ;;  %v1113_v33 = vld [vmem:[#allocation2 + $0x20] sm:$0xf]  ;;  %v1105_v39 = vld [vmem:[#allocation2 + $0x10] sm:$0xf]  ;;  %v1295_v55 = vld [vmem:[#allocation5 + $0x38] sm:$0xff] }
  0x29   :  { %503 = vmatpush.bf16.msra.mxu0 %v1223_v31  ;;  %v1123_v31 = vld [vmem:[#allocation2 + $0x38] sm:$0xf0]  ;;  %v1301_v63 = vld [vmem:[#allocation5 + $0x68] sm:$0xff]  ;;  %v1292_v3 = vld [vmem:[#allocation5 + $0x20] sm:$0xff] }
  0x2a   :  { %516 = vmatpush.bf16.msra.mxu1 %v1231_v32  ;;  %v1126_v32 = vor.u32 %v1278_v29, %v1123_v31  ;;  %v1300_v4 = vld [vmem:[#allocation5 + $0x60] sm:$0xff]  ;;  %v1299_v7 = vld [vmem:[#allocation5 + $0x58] sm:$0xff]  ;;  %v1290_v10 = vld [vmem:[#allocation5 + $0x10] sm:$0xff] }
  0x2b   :  { %529 = vmatpush.bf16.msra.mxu2 %v1239_v38  ;;  %v1298_v11 = vld [vmem:[#allocation5 + $0x50] sm:$0xff]  ;;  %v1289_v23 = vld [vmem:[#allocation5 + $0x8] sm:$0xff]  ;;  %v1288_v25 = vld [vmem:[#allocation5] sm:$0xff] }
  0x2c   :  { %504 = vmatmul.bf16.vlgmr.msra.gmra.mxu0 %v89_v40  ;;  %542 = vmatpush.bf16.msra.mxu3 %v1247_v42  ;;  %v1275_v40 = vld [vmem:[#allocation2 + $0x14] sm:$0xf0] }
  0x2d   :  { %548 = vmatpush.bf16.msrb.mxu0 %v1262_v36  ;;  %517 = vmatmul.bf16.vlgmr.msra.gmra.mxu1 %v90_v41  ;;  %v1114_v36 = vor.u32 %v1277_v34, %v1113_v33  ;;  %v1274_v41 = vld [vmem:[#allocation2 + $0x14] sm:$0xf]  ;;  %v1106_v42 = vor.u32 %v1275_v40, %v1105_v39  ;;  %v605_v27 = vld [vmem:[%s1619_s4] sm:$0x3]  ;;  %s1397_s4 = smov [#allocation7]  }
  0x2e   :  { %561 = vmatpush.bf16.msrb.mxu1 %v1270_v37  ;;  %530 = vmatmul.bf16.vlgmr.msra.gmra.mxu2 %v91_v47  ;;  %v1115_v37 = vld [vmem:[#allocation2 + $0x28] sm:$0xf0]  ;;  %v1097_v47 = vld [vmem:[#allocation2] sm:$0xf]  ;;  %v607_v28 = vperm.slane %v605_v27, 0  ;;  %v608_v29 = vperm.slane %v605_v27, 1 }
  0x2f   :  { %581 = vmatpush.bf16.msrb.mxu2 %v1271_v43  ;;  %543 = vmatmul.bf16.vlgmr.msra.gmra.mxu3 %v92_v48  ;;  %v1118_v38 = vor.u32 %v1276_v35, %v1115_v37  ;;  %v1107_v43 = vld [vmem:[#allocation2 + $0x18] sm:$0xf0]  ;;  %v1273_v48 = vld [vmem:[#allocation2 + $0x4] sm:$0xf0]  ;;  %v1312_v40 = vld [vmem:[%s1621_s6] ss:$0 sm:$0xff] }
  0x30   :  { %691 = vmatpush.bf16.msrb.mxu3 %v1154_v6  ;;  %v1291_v6 = vld [vmem:[#allocation5 + $0x18] sm:$0xff]  ;;  %s885_s21 = sshll.u32 %s1397_s4, 4  ;;  %s886_s21 = int_to_ptr.vmem [resolvable:$true] %s885_s21 }
  0x31   :  { %549 = vmatpush.bf16.msrb.mxu0 %v1261_v45 }
  0x32   :  { %562 = vmatpush.bf16.msrb.mxu1 %v1269_v46  ;;  %v1110_v46 = vor.u32 %v1274_v41, %v1107_v43 }
  0x33   :  { %704 = vmatpush.bf16.msra.mxu2 %v1158_v8 }
  0x34   :  { %692 = vmatpush.bf16.msrb.mxu3 %v1146_v12 }
  0x35   :  { %550 = vmatpush.bf16.msrb.mxu0 %v1260_v49  ;;  %v1272_v49 = vld [vmem:[#allocation2 + $0x4] sm:$0xf] }
  0x36   :  { %563 = vmatpush.bf16.msrb.mxu1 %v1268_v50  ;;  %v1098_v50 = vor.u32 %v1273_v48, %v1097_v47 }
  0x37   :  { %705 = vmatpush.bf16.msra.mxu2 %v1150_v14 }
  0x38   :  { %693 = vmatpush.bf16.msrb.mxu3 %v1138_v18 }
  0x39   :  { %551 = vmatpush.bf16.msrb.mxu0 %v1259_v51  ;;  %v1099_v51 = vld [vmem:[#allocation2 + $0x8] sm:$0xf0] }
  0x3a   :  { %564 = vmatpush.bf16.msrb.mxu1 %v1267_v52  ;;  %v1102_v52 = vor.u32 %v1272_v49, %v1099_v51 }
  0x3b   :  { %706 = vmatpush.bf16.msra.mxu2 %v1142_v20 }
  0x3c   :  { %694 = vmatpush.bf16.msrb.mxu3 %v1130_v24  ;;  %v1297_v24 = vld [vmem:[#allocation5 + $0x48] sm:$0xff] }
  0x3d   :  { %552 = vmatpush.bf16.msrb.mxu0 %v1258_v53 }
  0x3e   :  { %565 = vmatpush.bf16.msrb.mxu1 %v1266_v54  ;;  %1094 = vmatmul.msk.bf16.vlgmr.msrb.gmra.mxu2 %vm492_vm0, %v95_v58 }
  0x3f   :  { %707 = vmatpush.bf16.msra.mxu2 %v1134_v26  ;;  %v1296_v26 = vld [vmem:[#allocation5 + $0x40] sm:$0xff] }
  0x40   :  { %695 = vmatpush.bf16.msrb.mxu3 %v1122_v30 }
  0x41   :  { %553 = vmatpush.bf16.msrb.mxu0 %v1257_v56  ;;  %v1303_v56 = vld [vmem:[#allocation5 + $0x78] sm:$0xff] }
  0x42   :  { %566 = vmatpush.bf16.msrb.mxu1 %v1265_v57 }
  0x43   :  { %708 = vmatpush.bf16.msra.mxu2 %v1126_v32 }
  0x44   :  { %696 = vmatpush.bf16.msrb.mxu3 %v1114_v36 }
  0x45   :  { %554 = vmatpush.bf16.msrb.mxu0 %v1256_v59  ;;  %v1294_v59 = vld [vmem:[#allocation5 + $0x30] sm:$0xff] }
  0x46   :  { %567 = vmatpush.bf16.msrb.mxu1 %v1264_v60  ;;  %v1302_v60 = vld [vmem:[#allocation5 + $0x70] sm:$0xff] }
  0x47   :  { %709 = vmatpush.bf16.msra.mxu2 %v1118_v38 }
  0x48   :  { %697 = vmatpush.bf16.msrb.mxu3 %v1106_v42 }
  0x49   :  { %555 = vmatpush.bf16.msrb.mxu0 %v1255_v61  ;;  %v1311_v61 = vld [vmem:[%s1617_s2] ss:$0 sm:$0xff] }
  0x4a   :  { %568 = vmatpush.bf16.msrb.mxu1 %v1263_v62  ;;  %v1293_v62 = vld [vmem:[#allocation5 + $0x28] sm:$0xff] }
  0x4b   :  { %710 = vmatpush.bf16.msra.mxu2 %v1110_v46 }
  0x4c   :  { %556 = vmatmul.bf16.vlgmr.msrb.gmra.mxu0 %v93_v1  ;;  %698 = vmatpush.bf16.msrb.mxu3 %v1098_v50 }
  0x4d   :  { %569 = vmatmul.bf16.vlgmr.msrb.gmra.mxu1 %v94_v2  ;;  %853 = vmatpush.bf16.msra.mxu0 %v1295_v55 }
  0x4e   :  { %866 = vmatpush.bf16.msra.mxu1 %v1303_v56 }
  0x4f   :  { %711 = vmatpush.bf16.msra.mxu2 %v1102_v52 }
  0x51   :  { %854 = vmatpush.bf16.msra.mxu0 %v1294_v59 }
  0x52   :  { %867 = vmatpush.bf16.msra.mxu1 %v1302_v60 }
  0x55   :  { %855 = vmatpush.bf16.msra.mxu0 %v1293_v62 }
  0x56   :  { %868 = vmatpush.bf16.msra.mxu1 %v1301_v63 }
  0x59   :  { %856 = vmatpush.bf16.msra.mxu0 %v1292_v3 }
  0x5a   :  { %869 = vmatpush.bf16.msra.mxu1 %v1300_v4 }
  0x5d   :  { %857 = vmatpush.bf16.msra.mxu0 %v1291_v6 }
  0x5e   :  { %870 = vmatpush.bf16.msra.mxu1 %v1299_v7 }
  0x61   :  { %858 = vmatpush.bf16.msra.mxu0 %v1290_v10 }
  0x62   :  { %871 = vmatpush.bf16.msra.mxu1 %v1298_v11 }
  0x65   :  { %859 = vmatpush.bf16.msra.mxu0 %v1289_v23 }
  0x66   :  { %872 = vmatpush.bf16.msra.mxu1 %v1297_v24 }
  0x69   :  { %860 = vmatpush.bf16.msra.mxu0 %v1288_v25 }
  0x6a   :  { %873 = vmatpush.bf16.msra.mxu1 %v1296_v26 }
  0xa9   :  { %v505_v44 = vpop.f32.mrf.mxu0 }
  0xaa   :  { %v518_v45 = vpop.f32.mrf.mxu1  ;;  %v506_v0 = vadd.f32 %v1311_v61, %v505_v44 }
  0xac   :  { %v519_v5 = vadd.f32 %v518_v45, %v506_v0 }
  0xb1   :  { %v507_v53 = vpop.f32.mrf.mxu0  ;;  %v531_v57 = vpop.f32.mrf.mxu2 }
  0xb2   :  { %v520_v54 = vpop.f32.mrf.mxu1  ;;  %v544_v58 = vpop.f32.mrf.mxu3  ;;  %v532_v8 = vadd.f32 %v531_v57, %v519_v5 }
  0xb4   :  { %v545_v12 = vadd.f32 %v544_v58, %v532_v8 }
  0xb9   :  { %v533_v1 = vpop.f32.mrf.mxu2 }
  0xba   :  { %v546_v2 = vpop.f32.mrf.mxu3 }
  0xc1   :  { %v583_v9 = vpop.f32.mrf.mxu2 }
  0xc9   :  { %v557_v13 = vpop.f32.mrf.mxu0  ;;  %v585_v17 = vpop.f32.mrf.mxu2 }
  0xca   :  { %v570_v14 = vpop.f32.mrf.mxu1  ;;  %v558_v15 = vadd.f32 %v557_v13, %v545_v12 }
  0xcc   :  { %v571_v16 = vadd.f32 %v570_v14, %v558_v15 }
  0xce   :  { %v584_v18 = vadd.f32 %v583_v9, %v571_v16 }
  0xd0   :  { %v587_v19 = vmax.f32 %v584_v18, 0.0 }
  0xd1   :  { %v559_v20 = vpop.f32.mrf.mxu0 }
  0xd2   :  { %v572_v21 = vpop.f32.mrf.mxu1  ;;  %v588_v22 = vpack.c.bf16 %v587_v19, %v587_v19 }
  0xd4   :  { %699 = vmatmul.bf16.vlgmr.msrb.gmra.mxu3 %v588_v22  ;;  %712 = vmatmul.bf16.vlgmr.msra.gmra.mxu2 %v588_v22 }
 0x157   :  { %v700_v30 = vpop.f32.mrf.mxu3  ;;  %v713_v31 = vpop.f32.mrf.mxu2 }
 0x158   :  { %v701_v32 = vadd.f32 %v700_v30, %v607_v28  ;;  %v714_v33 = vadd.f32 %v713_v31, %v608_v29 }
 0x15a   :  { %v717_v34 = vmax.f32 %v701_v32, 0.0  ;;  %v718_v35 = vmax.f32 %v714_v33, 0.0 }
 0x15c   :  { %v719_v36 = vpack.c.bf16 %v717_v34, %v717_v34  ;;  %v720_v37 = vpack.c.bf16 %v718_v35, %v718_v35 }
 0x15e   :  { %861 = vmatmul.bf16.vlgmr.msra.gmra.mxu0 %v719_v36  ;;  %874 = vmatmul.bf16.vlgmr.msra.gmra.mxu1 %v720_v37 }
 0x15f   :  { %v702_v38 = vpop.f32.mrf.mxu3  ;;  %v715_v39 = vpop.f32.mrf.mxu2 }
 0x1db   :  { %v862_v41 = vpop.f32.mrf.mxu0  ;;  %v875_v42 = vpop.f32.mrf.mxu1 }
 0x1dc   :  { %v863_v43 = vadd.f32 %v1312_v40, %v862_v41 }
 0x1de   :  { %v876_v44 = vadd.f32 %v875_v42, %v863_v43 }
 0x1e0   :  { %879 = vst [vmem:[#allocation7] sm:$0xf] %v876_v44 }
 0x1e1   :  { %890 = dma.vmem_to_hbm [thread:$0]  %s886_s21, 64, %s888_s24, [#allocation4]  }
 0x1e3   :  { %v864_v45 = vpop.f32.mrf.mxu0  ;;  %v877_v46 = vpop.f32.mrf.mxu1 }
 0x1e4   :  { %1389 = dma.done.wait [#allocation4], 64  }
 0x1e5   :  { %1390 = vsyncadd [#allocation4], 4294967232 }
 0x1e6   :  { %895 = vsyncpa [#allocation3], 1 }
 0x1e7   :  { %896 = vsyncpa [#allocation6], 1 }
 0x1e8   :  { %897 = vsyncpa [#allocation4], 1 }

</bundles_post_ra>
